<compile_context>
chip_gen: v6e
topology: v6e:2x2x1
jax: 0.10.0
libtpu: 0.0.40
codegen_flags: <defaults>
</compile_context>

<pallas_src>
import functools

import jax
import jax.numpy as jnp
from jax.experimental import pallas as pl
from jax.experimental.pallas import tpu as pltpu


def _round_up(x, m):
    return ((x + m - 1) // m) * m


# dot_general "A @ B.T" dimension numbers (contract dim 1 of both operands),
# the same pattern the reference TPU flash-attention kernel uses for Q K^T.
_TRANS_B_DIMS = (((1,), (1,)), ((), ()))


def neufm_kernel(alpha, n_layers, k, *refs):
    """refs = (slab, [w_i, b_i] * n_layers, h, out_ref)."""
    slab_ref = refs[0]
    layer_refs = refs[1:1 + 2 * n_layers]
    h_ref = refs[1 + 2 * n_layers]
    out_ref = refs[2 + 2 * n_layers]

    slab_lo = slab_ref[...]                          # (TB, 4k) bf16
    slab32 = slab_lo.astype(jnp.float32)

    # ---- GMF branch: f32 elementwise product (VPU), then an MXU K-contraction
    # with a ones row so the reduction lands directly as a lane-dense (1, TB) row.
    prod = slab32[:, 0:k] * slab32[:, 2 * k:3 * k]   # (TB, k) f32
    ones_row = jnp.ones((1, k), jnp.float32)
    xg_row = jax.lax.dot_general(
        ones_row, prod, dimension_numbers=_TRANS_B_DIMS,
        preferred_element_type=jnp.float32)          # (1, TB) f32

    # ---- MLP branch: bf16 MXU matmuls (f32 accumulate), f32 bias + ReLU.
    # Layer 0's weight is zero-row-expanded to 4k rows, so it consumes the full
    # slab (the GMF columns multiply exact zeros) -> no in-kernel slice/concat.
    act_lo = slab_lo                                 # bf16 feed to the MXU
    act_f32 = slab32                                 # only used if n_layers == 0
    for i in range(n_layers):
        w = layer_refs[2 * i][...]                   # (in, out) bf16, VMEM-resident
        b = layer_refs[2 * i + 1][...]               # (1, out)  f32, VMEM-resident
        z = jnp.dot(act_lo, w, preferred_element_type=jnp.float32) + b
        act_f32 = jnp.maximum(z, 0.0)                # f32 ReLU (v5e-safe)
        act_lo = act_f32.astype(jnp.bfloat16)

    # Width-1 head as a K-contraction producing a lane-dense (1, TB) row; the
    # final activation stays f32 for closer parity with the f32 reference.
    xm_row = jax.lax.dot_general(
        h_ref[...], act_f32, dimension_numbers=_TRANS_B_DIMS,
        preferred_element_type=jnp.float32)          # (1, TB) f32

    # ---- NeuFM blend -> full-lane row store (out block is (1, 1, TB)).
    out_ref[0] = alpha * xg_row + (1.0 - alpha) * xm_row


@functools.partial(jax.jit, static_argnames=("alpha", "tb"))
def neufm_forward(user_table, item_table, kw, user_ids, item_ids, alpha, tb=2048):
    k = user_table.shape[1] // 2
    B = user_ids.shape[0]

    # Batch tile: large enough that each step moves ~1 MB+ of slab (amortizes
    # the ~0.35us fixed per-step overhead), a multiple of 16 sublanes (bf16
    # packing), and capped so the grid keeps >=2 steps when the batch allows it
    # (v7x megacore; harmless on single-TC v5e/v6e).
    TB = min(int(tb), _round_up(B, 16))
    if B > 16:
        TB = min(TB, _round_up((B + 1) // 2, 16))
    TB = max(16, _round_up(TB, 16))
    Bp = _round_up(B, TB)
    steps = Bp // TB

    # Pad the int32 ids (4 B/row) instead of the gathered bf16 rows; index 0 is
    # always valid, so no reliance on jnp.take clamping.
    if Bp != B:
        user_ids = jnp.pad(user_ids, (0, Bp - B))
        item_ids = jnp.pad(item_ids, (0, Bp - B))

    # Two gathers (fused tables) + one concat -> (Bp, 4k) bf16 slab
    # [pu_g | pu_m | qi_g | qi_m]. allow_input_fusion lets XLA fuse this chain
    # into the pallas_call input instead of round-tripping it through HBM.
    # TODO(synk): the arbitrary-row embedding gather itself stays plain-JAX glue.
    u_rows = jnp.take(user_table, user_ids, axis=0)      # (Bp, 2k) bf16
    i_rows = jnp.take(item_table, item_ids, axis=0)      # (Bp, 2k) bf16
    slab = jnp.concatenate([u_rows, i_rows], axis=1)     # (Bp, 4k) bf16

    flat_inputs = [slab]
    in_specs = [pl.BlockSpec((TB, 4 * k), lambda i: (i, 0))]
    # Weights/biases/head: full-array blocks with constant index_maps -> DMA'd
    # once, VMEM-resident across all grid steps.
    for w, b in kw["layers"]:
        flat_inputs += [w, b]
        in_specs += [pl.BlockSpec(w.shape, lambda i: (0, 0)),
                     pl.BlockSpec(b.shape, lambda i: (0, 0))]
    flat_inputs.append(kw["h"])
    in_specs.append(pl.BlockSpec(kw["h"].shape, lambda i: (0, 0)))

    n_layers = len(kw["layers"])
    kernel = functools.partial(neufm_kernel, float(alpha), n_layers, k)

    # Advisory cost estimate for XLA's scheduler.
    flops = 2 * Bp * k + 3 * Bp + 2 * Bp * kw["h"].shape[1]
    for w, _ in kw["layers"]:
        flops += 2 * Bp * w.shape[0] * w.shape[1]
    weight_bytes = sum(w.size * w.dtype.itemsize + b.size * 4
                       for w, b in kw["layers"]) + kw["h"].size * 4
    bytes_accessed = Bp * 4 * k * 2 + Bp * 4 + weight_bytes

    out = pl.pallas_call(
        kernel,
        out_shape=jax.ShapeDtypeStruct((steps, 1, TB), jnp.float32),
        grid=(steps,),
        in_specs=in_specs,
        out_specs=pl.BlockSpec((1, 1, TB), lambda i: (i, 0, 0)),
        compiler_params=pltpu.CompilerParams(
            dimension_semantics=("parallel",),
            vmem_limit_bytes=48 * 1024 * 1024,
            allow_input_fusion=[True] + [False] * (len(flat_inputs) - 1),
        ),
        cost_estimate=pl.CostEstimate(
            flops=int(flops), transcendentals=0,
            bytes_accessed=int(bytes_accessed)),
    )(*flat_inputs)

    return out.reshape(-1)[:B].reshape(B, 1)


def prepare_kernel_weights(params, k):
    """One-time kernel-layout prep (outside the jitted forward, so no per-call
    transpose/cast HLOs): (in, out) bf16 weights — layer 0 zero-row-expanded to
    (4k, h1) to consume the whole slab — (1, out) f32 biases, (1, prev) f32 head."""
    layers = []
    for idx, (w, b) in enumerate(params["mlp_layers"]):
        wt = jnp.asarray(w, jnp.bfloat16).T                    # (in, out)
        if idx == 0:
            z = jnp.zeros((k, wt.shape[1]), wt.dtype)
            # slab columns: [pu_g | pu_m | qi_g | qi_m]; the MLP uses pu_m, qi_m.
            wt = jnp.concatenate([z, wt[:k], z, wt[k:]], axis=0)  # (4k, out)
        layers.append((wt, jnp.asarray(b, jnp.float32).reshape(1, -1)))
    h = jnp.asarray(params["mlp_h"], jnp.float32).reshape(1, -1)
    if not layers:  # degenerate no-hidden-layer case: head reads the slab directly
        z = jnp.zeros((1, k), h.dtype)
        h = jnp.concatenate([z, h[:, :k], z, h[:, k:]], axis=1)
    return {"layers": layers, "h": h}


def neufm_reference(params, user_ids, item_ids, alpha):
    """Pure-JAX f32 reference mirroring the PyTorch forward (same stored params)."""
    k = params["user_table"].shape[1] // 2
    f32 = lambda a: a.astype(jnp.float32)
    u = f32(params["user_table"][user_ids])
    it = f32(params["item_table"][item_ids])
    pu_g, pu_m = u[:, :k], u[:, k:]
    qi_g, qi_m = it[:, :k], it[:, k:]
    xg = jnp.sum(pu_g * qi_g, axis=1, keepdims=True)
    x = jnp.concatenate([pu_m, qi_m], axis=1)
    for w, b in params["mlp_layers"]:
        x = jax.nn.relu(x @ f32(w).T + f32(b))
    xm = x @ f32(params["mlp_h"]).T
    return alpha * xg + (1 - alpha) * xm


def init_params(key, n_users, n_items, k, layer_sizes):
    keys = jax.random.split(key, 3 + 2 * len(layer_sizes))
    ki = iter(keys)

    def nrm(shape, dtype):
        return (0.01 * jax.random.normal(next(ki), shape)).astype(dtype)

    params = {
        # Fused pairwise tables (bf16 storage halves the dominant gather traffic
        # and doubles the bytes per gathered row vs separate tables).
        "user_table": nrm((n_users, 2 * k), jnp.bfloat16),   # [gmf_P | mlp_P]
        "item_table": nrm((n_items, 2 * k), jnp.bfloat16),   # [gmf_Q | mlp_Q]
    }
    layers = []
    prev = 2 * k
    for size in layer_sizes:
        w = nrm((size, prev), jnp.bfloat16)   # PyTorch Linear layout (out, in)
        b = nrm((size,), jnp.float32)
        layers.append((w, b))
        prev = size
    params["mlp_layers"] = layers
    params["mlp_h"] = nrm((1, prev), jnp.float32)  # bias-free head
    return params


if __name__ == "__main__":
    root = jax.random.PRNGKey(0)
    p_key, u_key, i_key, p2_key, u2_key, i2_key = jax.random.split(root, 6)

    # ---- small demo (single grid step) ----
    n_users, n_items, k = 20, 30, 16
    layer_sizes = (32, 16, 8)
    batch, alpha = 8, 0.5
    params = init_params(p_key, n_users, n_items, k, layer_sizes)
    kw = prepare_kernel_weights(params, k)
    user_ids = jax.random.randint(u_key, (batch,), 0, n_users, dtype=jnp.int32)
    item_ids = jax.random.randint(i_key, (batch,), 0, n_items, dtype=jnp.int32)

    out = jax.block_until_ready(
        neufm_forward(params["user_table"], params["item_table"], kw,
                      user_ids, item_ids, alpha=alpha))
    ref = neufm_reference(params, user_ids, item_ids, alpha)
    assert out.shape == (batch, 1)
    assert jnp.allclose(out, ref, atol=1e-4, rtol=1e-2), float(
        jnp.max(jnp.abs(out - ref)))

    # ---- multi-tile check: exercises the batch grid, id padding, resident weights ----
    n_users2, n_items2, k2 = 1000, 1500, 32
    layer_sizes2 = (64, 32, 16)
    batch2, alpha2 = 300, 0.25
    params2 = init_params(p2_key, n_users2, n_items2, k2, layer_sizes2)
    kw2 = prepare_kernel_weights(params2, k2)
    user_ids2 = jax.random.randint(u2_key, (batch2,), 0, n_users2, dtype=jnp.int32)
    item_ids2 = jax.random.randint(i2_key, (batch2,), 0, n_items2, dtype=jnp.int32)

    out2 = jax.block_until_ready(
        neufm_forward(params2["user_table"], params2["item_table"], kw2,
                      user_ids2, item_ids2, alpha=alpha2, tb=128))
    ref2 = neufm_reference(params2, user_ids2, item_ids2, alpha2)
    assert out2.shape == (batch2, 1)
    assert jnp.allclose(out2, ref2, atol=1e-4, rtol=1e-2), float(
        jnp.max(jnp.abs(out2 - ref2)))

    print("KERNEL_OK")
</pallas_src>

<mosaic_0001>
module attributes {stable_mosaic.version = 11 : i64} {
  func.func @neufm_kernel(%arg0: i32, %arg1: memref<16x64xbf16, #tpu.memory_space<vmem>>, %arg2: memref<64x32xbf16, #tpu.memory_space<vmem>>, %arg3: memref<1x32xf32, #tpu.memory_space<vmem>>, %arg4: memref<32x16xbf16, #tpu.memory_space<vmem>>, %arg5: memref<1x16xf32, #tpu.memory_space<vmem>>, %arg6: memref<16x8xbf16, #tpu.memory_space<vmem>>, %arg7: memref<1x8xf32, #tpu.memory_space<vmem>>, %arg8: memref<1x8xf32, #tpu.memory_space<vmem>>, %arg9: memref<1x1x16xf32, #tpu.memory_space<vmem>>) attributes {dimension_semantics = [#tpu.dimension_semantics<parallel>], iteration_bounds = array<i64: 1>, scalar_prefetch = 0 : i64, scratch_operands = 0 : i64, tpu.core_type = #tpu.core_type<tc>, window_params = [{transform_indices = @transform_0, window_bounds = array<i64: 16, 64>}, {pipeline_mode = #tpu.pipeline_mode<synchronous>, transform_indices = @transform_1, window_bounds = array<i64: 64, 32>}, {pipeline_mode = #tpu.pipeline_mode<synchronous>, transform_indices = @transform_2, window_bounds = array<i64: 1, 32>}, {pipeline_mode = #tpu.pipeline_mode<synchronous>, transform_indices = @transform_3, window_bounds = array<i64: 32, 16>}, {pipeline_mode = #tpu.pipeline_mode<synchronous>, transform_indices = @transform_4, window_bounds = array<i64: 1, 16>}, {pipeline_mode = #tpu.pipeline_mode<synchronous>, transform_indices = @transform_5, window_bounds = array<i64: 16, 8>}, {pipeline_mode = #tpu.pipeline_mode<synchronous>, transform_indices = @transform_6, window_bounds = array<i64: 1, 8>}, {pipeline_mode = #tpu.pipeline_mode<synchronous>, transform_indices = @transform_7, window_bounds = array<i64: 1, 8>}, {transform_indices = @transform_8, window_bounds = array<i64: 1, 1, 16>}]} {
    %c0 = arith.constant 0 : index
    %c0_0 = arith.constant 0 : index
    %0 = vector.load %arg1[%c0, %c0_0] : memref<16x64xbf16, #tpu.memory_space<vmem>>, vector<16x64xbf16>
    %1 = arith.extf %0 : vector<16x64xbf16> to vector<16x64xf32>
    %2 = vector.extract_strided_slice %1 {offsets = [0, 0], sizes = [16, 16], strides = [1, 1]} : vector<16x64xf32> to vector<16x16xf32>
    %3 = vector.extract_strided_slice %1 {offsets = [0, 32], sizes = [16, 16], strides = [1, 1]} : vector<16x64xf32> to vector<16x16xf32>
    %4 = arith.mulf %2, %3 : vector<16x16xf32>
    %cst = arith.constant 1.000000e+00 : f32
    %5 = vector.broadcast %cst : f32 to vector<1x16xf32>
    %cst_1 = arith.constant dense<0.000000e+00> : vector<1x16xf32>
    %6 = tpu.matmul %5, %4, %cst_1 {dimension_numbers = #tpu.dot_dimension_numbers<[1], [1], [0], [0], [0, 0, 1, 0], [], []>} : vector<1x16xf32>, vector<16x16xf32>, vector<1x16xf32> -> vector<1x16xf32>
    %c0_2 = arith.constant 0 : index
    %c0_3 = arith.constant 0 : index
    %7 = vector.load %arg2[%c0_2, %c0_3] : memref<64x32xbf16, #tpu.memory_space<vmem>>, vector<64x32xbf16>
    %c0_4 = arith.constant 0 : index
    %c0_5 = arith.constant 0 : index
    %8 = vector.load %arg3[%c0_4, %c0_5] : memref<1x32xf32, #tpu.memory_space<vmem>>, vector<1x32xf32>
    %cst_6 = arith.constant dense<0.000000e+00> : vector<16x32xf32>
    %9 = tpu.matmul %0, %7, %cst_6 {dimension_numbers = #tpu.dot_dimension_numbers<[1], [0], [0], [1], [0, 0, 1, 1], [], []>} : vector<16x64xbf16>, vector<64x32xbf16>, vector<16x32xf32> -> vector<16x32xf32>
    %10 = vector.broadcast %8 : vector<1x32xf32> to vector<16x32xf32>
    %11 = arith.addf %9, %10 : vector<16x32xf32>
    %cst_7 = arith.constant 0.000000e+00 : f32
    %12 = vector.broadcast %cst_7 : f32 to vector<16x32xf32>
    %13 = arith.maximumf %11, %12 : vector<16x32xf32>
    %14 = arith.truncf %13 : vector<16x32xf32> to vector<16x32xbf16>
    %c0_8 = arith.constant 0 : index
    %c0_9 = arith.constant 0 : index
    %15 = vector.load %arg4[%c0_8, %c0_9] : memref<32x16xbf16, #tpu.memory_space<vmem>>, vector<32x16xbf16>
    %c0_10 = arith.constant 0 : index
    %c0_11 = arith.constant 0 : index
    %16 = vector.load %arg5[%c0_10, %c0_11] : memref<1x16xf32, #tpu.memory_space<vmem>>, vector<1x16xf32>
    %cst_12 = arith.constant dense<0.000000e+00> : vector<16x16xf32>
    %17 = tpu.matmul %14, %15, %cst_12 {dimension_numbers = #tpu.dot_dimension_numbers<[1], [0], [0], [1], [0, 0, 1, 1], [], []>} : vector<16x32xbf16>, vector<32x16xbf16>, vector<16x16xf32> -> vector<16x16xf32>
    %18 = vector.broadcast %16 : vector<1x16xf32> to vector<16x16xf32>
    %19 = arith.addf %17, %18 : vector<16x16xf32>
    %cst_13 = arith.constant 0.000000e+00 : f32
    %20 = vector.broadcast %cst_13 : f32 to vector<16x16xf32>
    %21 = arith.maximumf %19, %20 : vector<16x16xf32>
    %22 = arith.truncf %21 : vector<16x16xf32> to vector<16x16xbf16>
    %c0_14 = arith.constant 0 : index
    %c0_15 = arith.constant 0 : index
    %23 = vector.load %arg6[%c0_14, %c0_15] : memref<16x8xbf16, #tpu.memory_space<vmem>>, vector<16x8xbf16>
    %c0_16 = arith.constant 0 : index
    %c0_17 = arith.constant 0 : index
    %24 = vector.load %arg7[%c0_16, %c0_17] : memref<1x8xf32, #tpu.memory_space<vmem>>, vector<1x8xf32>
    %cst_18 = arith.constant dense<0.000000e+00> : vector<16x8xf32>
    %25 = tpu.matmul %22, %23, %cst_18 {dimension_numbers = #tpu.dot_dimension_numbers<[1], [0], [0], [1], [0, 0, 1, 1], [], []>} : vector<16x16xbf16>, vector<16x8xbf16>, vector<16x8xf32> -> vector<16x8xf32>
    %26 = vector.broadcast %24 : vector<1x8xf32> to vector<16x8xf32>
    %27 = arith.addf %25, %26 : vector<16x8xf32>
    %cst_19 = arith.constant 0.000000e+00 : f32
    %28 = vector.broadcast %cst_19 : f32 to vector<16x8xf32>
    %29 = arith.maximumf %27, %28 : vector<16x8xf32>
    %c0_20 = arith.constant 0 : index
    %c0_21 = arith.constant 0 : index
    %30 = vector.load %arg8[%c0_20, %c0_21] : memref<1x8xf32, #tpu.memory_space<vmem>>, vector<1x8xf32>
    %cst_22 = arith.constant dense<0.000000e+00> : vector<1x16xf32>
    %31 = tpu.matmul %30, %29, %cst_22 {dimension_numbers = #tpu.dot_dimension_numbers<[1], [1], [0], [0], [0, 0, 1, 0], [], []>} : vector<1x8xf32>, vector<16x8xf32>, vector<1x16xf32> -> vector<1x16xf32>
    %cst_23 = arith.constant 5.000000e-01 : f32
    %32 = vector.broadcast %cst_23 : f32 to vector<1x16xf32>
    %33 = arith.mulf %32, %6 : vector<1x16xf32>
    %cst_24 = arith.constant 5.000000e-01 : f32
    %34 = vector.broadcast %cst_24 : f32 to vector<1x16xf32>
    %35 = arith.mulf %34, %31 : vector<1x16xf32>
    %36 = arith.addf %33, %35 : vector<1x16xf32>
    %c0_25 = arith.constant 0 : index
    %c0_26 = arith.constant 0 : index
    %c0_27 = arith.constant 0 : index
    %37 = vector.load %arg9[%c0_25, %c0_26, %c0_27] : memref<1x1x16xf32, #tpu.memory_space<vmem>>, vector<1x1x16xf32>
    %38 = vector.shape_cast %37 : vector<1x1x16xf32> to vector<1x16xf32>
    %39 = vector.shape_cast %36 : vector<1x16xf32> to vector<1x1x16xf32>
    tpu.vector_store %arg9[%c0_25, %c0_26, %c0_27], %39 {strides = array<i32>} : memref<1x1x16xf32, #tpu.memory_space<vmem>>, vector<1x1x16xf32>,
    return
  }
  func.func @transform_0(%arg0: i32) -> (i32, i32) {
    %c0_i32 = arith.constant 0 : i32
    %c0_i32_0 = arith.constant 0 : i32
    return %arg0, %c0_i32 : i32, i32
  }
  func.func @transform_1(%arg0: i32) -> (i32, i32) {
    %c0_i32 = arith.constant 0 : i32
    %c0_i32_0 = arith.constant 0 : i32
    %c0_i32_1 = arith.constant 0 : i32
    return %c0_i32, %c0_i32_0 : i32, i32
  }
  func.func @transform_2(%arg0: i32) -> (i32, i32) {
    %c0_i32 = arith.constant 0 : i32
    %c0_i32_0 = arith.constant 0 : i32
    %c0_i32_1 = arith.constant 0 : i32
    return %c0_i32, %c0_i32_0 : i32, i32
  }
  func.func @transform_3(%arg0: i32) -> (i32, i32) {
    %c0_i32 = arith.constant 0 : i32
    %c0_i32_0 = arith.constant 0 : i32
    %c0_i32_1 = arith.constant 0 : i32
    return %c0_i32, %c0_i32_0 : i32, i32
  }
  func.func @transform_4(%arg0: i32) -> (i32, i32) {
    %c0_i32 = arith.constant 0 : i32
    %c0_i32_0 = arith.constant 0 : i32
    %c0_i32_1 = arith.constant 0 : i32
    return %c0_i32, %c0_i32_0 : i32, i32
  }
  func.func @transform_5(%arg0: i32) -> (i32, i32) {
    %c0_i32 = arith.constant 0 : i32
    %c0_i32_0 = arith.constant 0 : i32
    %c0_i32_1 = arith.constant 0 : i32
    return %c0_i32, %c0_i32_0 : i32, i32
  }
  func.func @transform_6(%arg0: i32) -> (i32, i32) {
    %c0_i32 = arith.constant 0 : i32
    %c0_i32_0 = arith.constant 0 : i32
    %c0_i32_1 = arith.constant 0 : i32
    return %c0_i32, %c0_i32_0 : i32, i32
  }
  func.func @transform_7(%arg0: i32) -> (i32, i32) {
    %c0_i32 = arith.constant 0 : i32
    %c0_i32_0 = arith.constant 0 : i32
    %c0_i32_1 = arith.constant 0 : i32
    return %c0_i32, %c0_i32_0 : i32, i32
  }
  func.func @transform_8(%arg0: i32) -> (i32, i32, i32) {
    %c0_i32 = arith.constant 0 : i32
    %c0_i32_0 = arith.constant 0 : i32
    %c0_i32_1 = arith.constant 0 : i32
    return %arg0, %c0_i32, %c0_i32_0 : i32, i32, i32
  }
}

</mosaic_0001>

<bundles_post_ra>
// kernel: neufm_forward.2
= control target key start
LH: loop header
LB: loop body
LE: loop exit
PB: predicated region body
PF: predicated region fallthrough
CT: control target
= control target key end

     0   :  { %s820_s0 = inlined_call_operand.vmem [shape: bf16[64,32], index: 0, kind: input, shape index: {}]   ;;  %s821_s1 = inlined_call_operand.vmem [shape: f32[1,32], index: 1, kind: input, shape index: {}]   ;;  %s822_s2 = inlined_call_operand.vmem [shape: bf16[32,16], index: 2, kind: input, shape index: {}]   ;;  %s823_s3 = inlined_call_operand.vmem [shape: f32[1,16], index: 3, kind: input, shape index: {}]   ;;  %s824_s4 = inlined_call_operand.vmem [shape: bf16[16,8], index: 4, kind: input, shape index: {}]   ;;  %s825_s5 = inlined_call_operand.vmem [shape: f32[1,8], index: 5, kind: input, shape index: {}]   ;;  %s826_s6 = inlined_call_operand.vmem [shape: f32[1,8], index: 6, kind: input, shape index: {}]   ;;  %s827_s7 = inlined_call_operand.vmem [shape: bf16[16,32], index: 7, kind: input, shape index: {}]   ;;  %s828_s8 = inlined_call_operand.<no memory space> [shape: bf16[], index: 8, kind: input, shape index: {}]   ;;  %s829_s9 = inlined_call_operand.vmem [shape: bf16[16,32], index: 9, kind: input, shape index: {}]   ;;  %s830_s10 = inlined_call_operand.vmem [shape: f32[1,1,16], index: 10, kind: output, shape index: {}]  }
   0x1   :  { %v15_v0 = vstv %s828_s8 }
   0x2   :  { %v16_v1 = vunpack.i.l.bf16 %v15_v0 }
   0x3   :  { %v82_v2 = vld [vmem:[%s827_s7] sm:$0xff]   ;;  %v85_v3 = vlaneseq  ;;  %v688_v4 = vmov 0.0   ;;  %v679_v5 = vld [vmem:[%s820_s0 + $0x18] sm:$0xff]   ;;  %v680_v7 = vld [vmem:[%s820_s0 + $0x10] sm:$0xff]   ;;  %vm689_vm1 = vmmov 0   ;;  %s690_s21 = smov 32  }
   0x4   :  { %636 = vmatprep.subr.bf16.mxu1 %v688_v4  ;;  %629 = vmatprep.subr.mxu0 %v688_v4  ;;  %v83_v8 = vunpack.c.l.bf16 %v82_v2  ;;  %v135_v9 = vunpack.c.h.bf16 %v82_v2  ;;  %v681_v13 = vld [vmem:[%s820_s0 + $0x8] sm:$0xff]   ;;  %v682_v17 = vld [vmem:[%s820_s0] sm:$0xff]   ;;  %vm315_vm4 = vcmask 523264   ;;  %s691_s0 = smov 96   ;;  %vm191_vm5 = vcmask 130048  }
   0x5   :  { %v86_v6 = vand.u32 127, %v85_v3  ;;  %637 = vmatpush3.bf16.msra.mxu1 %v679_v5  ;;  %644 = vmatprep.mubr.msk.bf16.mxu1 %vm689_vm1, %v688_v4  ;;  %v105_v18 = vld [vmem:[%s829_s9] sm:$0xff]   ;;  %v684_v37 = vld [vmem:[%s822_s2 + $0x8] sm:$0xff]   ;;  %v692_v38 = vmov 1.0   ;;  %vm386_vm6 = vcmask 261120   ;;  %vm496_vm7 = vcmask 64512  }
   0x6   :  { %638 = vmatprep.subr.bf16.mxu1 %v688_v4  ;;  %633 = vmatprep.mubr.msk.f32.mxu0 %vm689_vm1, %v688_v4  ;;  %v106_v19 = vunpack.c.l.bf16 %v105_v18  ;;  %v160_v20 = vunpack.c.h.bf16 %v105_v18  ;;  %v685_v39 = vld [vmem:[%s822_s2] sm:$0xff]   ;;  %vm579_vm8 = vcmask 122880  }
   0x7   :  { %v87_v10 = vadd.s32 128, %v86_v6  ;;  %vm92_vm0 = vcmp.lt.s32.totalorder %v86_v6, 96  ;;  %vm111_vm3 = vcmp.lt.s32.totalorder %v86_v6, 32  ;;  %v596_v40 = vld [vmem:[%s821_s1] ss:$0 sm:$0xff] }
   0x8   :  { %v112_v21 = vsel %vm111_vm3, %v106_v19, %v16_v1  ;;  %v166_v22 = vsel %vm111_vm3, %v160_v20, %v16_v1  ;;  %v686_v50 = vld [vmem:[%s824_s4] sm:$0xff]  }
   0x9   :  { %vm88_vm2 = vcmp.lt.s32.totalorder %v87_v10, 160  ;;  %639 = vmatpush3.bf16.msra.mxu1 %v680_v7  ;;  %v603_v53 = vld [vmem:[%s823_s3] ss:$0 sm:$0xff] }
   0xa   :  { %v89_v11 = vsel %vm88_vm2, %v83_v8, %v16_v1  ;;  %v142_v12 = vsel %vm88_vm2, %v135_v9, %v16_v1  ;;  %640 = vmatprep.subr.bf16.mxu1 %v688_v4  ;;  %v495_v9 = vld [vmem:[%s826_s6] sm:$0x1] }
   0xb   :  { %v93_v14 = vsel %vm92_vm0, %v89_v11, %v16_v1  ;;  %v146_v15 = vsel %vm92_vm0, %v142_v12, %v16_v1  ;;  %v607_v1 = vld [vmem:[%s825_s5] ss:$0 sm:$0xff] }
   0xc   :  { %v674_v16 = vpack.i.bf16 %v146_v15, %v93_v14 }
   0xd   :  { %641 = vmatpush3.bf16.msra.mxu1 %v681_v13 }
   0xe   :  { %675 = vrot.lane.b32.xlu0 %v674_v16, %s690_s21  ;;  %642 = vmatprep.subr.bf16.mxu1 %v688_v4 }
  0x11   :  { %643 = vmatpush3.bf16.msra.mxu1 %v682_v17 }
  0x12   :  { %662 = vmatprep.subr.mxu1 %v688_v4 }
  0x80   :  { %v676_v23 = vpop.permute.xlu0 %675 }
  0x81   :  { %v678_v24 = vunpack.i.h.bf16 %v676_v23  ;;  %v677_v25 = vunpack.i.l.bf16 %v676_v23 }
  0x83   :  { %v169_v26 = vmax.f32 %v166_v22, %v678_v24  ;;  %v115_v27 = vmax.f32 %v112_v21, %v677_v25 }
  0x85   :  { %v172_v28 = vpack.c.bf16 %v688_v4, %v169_v26  ;;  %v117_v29 = vpack.c.bf16 %v688_v4, %v115_v27 }
  0x87   :  { %175 = vst [vmem:[#allocation12 + $0x4] sm:$0xf] %v172_v28  ;;  %120 = vst [vmem:[#allocation12] sm:$0xf] %v117_v29 }
  0x8e   :  { %v178_v30 = vld [vmem:[#allocation12] sm:$0xff]  }
  0x8f   :  { %v180_v31 = vunpack.c.h.bf16 %v178_v30  ;;  %v179_v32 = vunpack.c.l.bf16 %v178_v30  ;;  %645 = vmatmul.mubr.msk.bf16.vlgmr.msra.gmra.mxu1 %vm315_vm4, %v178_v30 }
  0x90   :  { %666 = vmatprep.mubr.msk.f32.mxu1 %vm689_vm1, %v688_v4 }
  0x91   :  { %185 = vrot.lane.b32.xlu0 %v180_v31, %s691_s0  ;;  %183 = vrot.lane.b32.xlu1 %v179_v32, %s691_s0 }
 0x103   :  { %v186_v33 = vpop.permute.xlu0 %185  ;;  %v184_v35 = vpop.permute.xlu1 %183 }
 0x104   :  { %v190_v34 = vmul.f32 %v186_v33, %v180_v31  ;;  %v189_v36 = vmul.f32 %v184_v35, %v179_v32 }
 0x106   :  { %630 = vmatpush3.xpose.msk.msra.mxu0 %vm191_vm5, %v190_v34 }
 0x107   :  { %631 = vmatprep.subr.mxu0 %v688_v4 }
 0x10a   :  { %632 = vmatpush3.xpose.msk.msra.mxu0 %vm191_vm5, %v189_v36 }
 0x10b   :  { %648 = vmatprep.subr.bf16.mxu0 %v688_v4 }
 0x10d   :  { %634 = vmatmul.mubr.msk.f32.vlgmr.msra.gmra.mxu0 %vm191_vm5, %v692_v38 }
 0x10e   :  { %649 = vmatpush3.bf16.msra.mxu0 %v684_v37  ;;  %652 = vmatprep.mubr.msk.bf16.mxu0 %vm689_vm1, %v688_v4 }
 0x10f   :  { %650 = vmatprep.subr.bf16.mxu0 %v688_v4 }
 0x112   :  { %651 = vmatpush3.bf16.msra.mxu0 %v685_v39 }
 0x113   :  { %656 = vmatprep.subr.bf16.mxu0 %v688_v4 }
 0x14f   :  { %v353_v41 = vpop.f32.mrf.mxu1 }
 0x150   :  { %v354_v43 = vadd.f32 %v596_v40, %v353_v41 }
 0x151   :  { %v646_v42 = vpop.f32.mrf.mxu1 }
 0x152   :  { %v360_v47 = vmax.f32 %v354_v43, 0.0 }
 0x153   :  { %v356_v44 = vpop.f32.mrf.mxu1 }
 0x154   :  { %v357_v45 = vadd.f32 %v596_v40, %v356_v44 }
 0x155   :  { %v647_v46 = vpop.f32.mrf.mxu1 }
 0x156   :  { %v361_v48 = vmax.f32 %v357_v45, 0.0 }
 0x158   :  { %v362_v49 = vpack.c.bf16 %v361_v48, %v360_v47 }
 0x15a   :  { %653 = vmatmul.mubr.msk.bf16.vlgmr.msra.gmra.mxu0 %vm386_vm6, %v362_v49 }
 0x15b   :  { %658 = vmatprep.mubr.msk.bf16.mxu0 %vm689_vm1, %v688_v4  ;;  %657 = vmatpush3.bf16.msra.mxu0 %v686_v50 }
 0x1cd   :  { %v267_v51 = vpop.f32.mrf.mxu0 }
 0x1ce   :  { %v576_v11 = vmul.f32 0.5, %v267_v51 }
 0x1cf   :  { %v635_v52 = vpop.f32.mrf.mxu0 }
 0x21a   :  { %v424_v54 = vpop.f32.mrf.mxu0 }
 0x21b   :  { %v425_v56 = vadd.f32 %v603_v53, %v424_v54 }
 0x21c   :  { %v654_v55 = vpop.f32.mrf.mxu0 }
 0x21d   :  { %v431_v60 = vmax.f32 %v425_v56, 0.0 }
 0x21e   :  { %v427_v57 = vpop.f32.mrf.mxu0 }
 0x21f   :  { %v428_v58 = vadd.f32 %v603_v53, %v427_v57 }
 0x220   :  { %v655_v59 = vpop.f32.mrf.mxu0 }
 0x221   :  { %v432_v61 = vmax.f32 %v428_v58, 0.0 }
 0x223   :  { %v433_v62 = vpack.c.bf16 %v432_v61, %v431_v60 }
 0x225   :  { %659 = vmatmul.mubr.msk.bf16.vlgmr.msra.gmra.mxu0 %vm191_vm5, %v433_v62 }
 0x2e5   :  { %v486_v63 = vpop.f32.mrf.mxu0 }
 0x2e6   :  { %v487_v6 = vadd.f32 %v607_v1, %v486_v63 }
 0x2e7   :  { %v660_v0 = vpop.f32.mrf.mxu0 }
 0x2e8   :  { %v493_v8 = vmax.f32 %v487_v6, 0.0 }
 0x2e9   :  { %v489_v2 = vpop.f32.mrf.mxu0 }
 0x2ea   :  { %v490_v3 = vadd.f32 %v607_v1, %v489_v2 }
 0x2eb   :  { %v661_v5 = vpop.f32.mrf.mxu0 }
 0x2ec   :  { %v494_v7 = vmax.f32 %v490_v3, 0.0 }
 0x2ee   :  { %663 = vmatpush3.xpose.msk.msra.mxu1 %vm496_vm7, %v494_v7 }
 0x2ef   :  { %664 = vmatprep.subr.mxu1 %v688_v4 }
 0x2f2   :  { %665 = vmatpush3.xpose.msk.msra.mxu1 %vm496_vm7, %v493_v8 }
 0x2f5   :  { %667 = vmatmul.mubr.msk.f32.vlgmr.msra.gmra.mxu1 %vm496_vm7, %v495_v9 }
 0x3b5   :  { %v572_v10 = vpop.f32.mrf.mxu1 }
 0x3b6   :  { %v577_v12 = vmul.f32 0.5, %v572_v10 }
 0x3b7   :  { %v668_v13 = vpop.f32.mrf.mxu1 }
 0x3b8   :  { %v578_v14 = vadd.f32 %v577_v12, %v576_v11 }
 0x3ba   :  { %580 = vst.msk [vmem:[%s830_s10] sm:$0x1] %vm579_vm8, %v578_v14 }

</bundles_post_ra>
